<compile_context>
chip_gen: v7x
topology: tpu7x:2x2x1
jax: 0.10.0
libtpu: 0.0.40
codegen_flags: <defaults>
</compile_context>

<pallas_src>
import functools

import jax
import jax.numpy as jnp
from jax.experimental import pallas as pl
from jax.experimental.pallas import tpu as pltpu


def _round_up(x: int, m: int) -> int:
    return (x + m - 1) // m * m


def _pick_tile_n(n: int, target: int, granule: int) -> int:
    """Row-tile size: sized from cdiv (no dead rows), sublane-aligned, and
    split into >=2 blocks when N is large enough (v7x has 2 TensorCores)."""
    steps = pl.cdiv(n, target)
    if n > max(256, 2 * granule):
        steps = max(steps, 2)
    if steps <= 1:
        return n                       # single full-extent block (always legal)
    return _round_up(pl.cdiv(n, steps), granule)


def _mlp_layer_kernel(x_ref, w1_ref, b1_ref, g_ref, beta_ref, w2_ref, b2_ref,
                      o_ref, *, eps: float):
    # ---- Linear 1: native-dtype operands on the MXU, f32 accumulation.
    h = jnp.dot(x_ref[...], w1_ref[...], preferred_element_type=jnp.float32)
    h = h + b1_ref[...]                                   # b1 already f32

    # ---- LayerNorm over the true hidden width (no padded columns -> exact).
    mean = jnp.mean(h, axis=-1, keepdims=True)
    centered = h - mean
    var = jnp.mean(centered * centered, axis=-1, keepdims=True)
    inv_std = jax.lax.rsqrt(var + eps)                    # EUP
    h = centered * inv_std * g_ref[...] + beta_ref[...]

    # ---- ReLU (VPU, f32)
    h = jnp.maximum(h, 0.0)

    # ---- Linear 2: downcast activations only if weights are narrower than f32
    # (keeps the fast bf16 MXU path on v6e/v7x without bf16 elementwise math).
    w2 = w2_ref[...]
    if w2.dtype != jnp.float32:
        h = h.astype(w2.dtype)
    y = jnp.dot(h, w2, preferred_element_type=jnp.float32) + b2_ref[...]

    o_ref[...] = y.astype(o_ref.dtype)


def mlp_layer(x, w1, b1, gamma, beta, w2, b2, *, tile_n=512, eps=1e-5,
              vmem_limit_bytes=None):
    """x: [N, input_dim] -> [N, output_dim]. No wrapper-side padding passes."""
    N, d_in = x.shape
    hidden = w1.shape[1]
    d_out = w2.shape[1]
    assert w1.shape[0] == d_in and w2.shape[0] == hidden

    itemsize = jnp.dtype(x.dtype).itemsize
    granule = {4: 8, 2: 16, 1: 32}.get(itemsize, 8)       # sublane packing
    tile_n = _pick_tile_n(N, tile_n, granule)
    grid = (pl.cdiv(N, tile_n),)

    # f32 bias / LN vectors prepared once (no per-step casts inside the kernel).
    b1f = b1.astype(jnp.float32).reshape(1, hidden)
    gf = gamma.astype(jnp.float32).reshape(1, hidden)
    bef = beta.astype(jnp.float32).reshape(1, hidden)
    b2f = b2.astype(jnp.float32).reshape(1, d_out)

    # VMEM estimate (lane-padded): 2x-buffered x/out streams, 1x weights,
    # plus f32 LN temporaries.  Raise the scoped limit past the smallest
    # per-generation default (16 MiB on v5e); cap with headroom under v7x 64MiB.
    if vmem_limit_bytes is None:
        lane = lambda c: _round_up(c, 128)
        wsz = jnp.dtype(w1.dtype).itemsize
        rows = _round_up(tile_n, 8)
        est = (2 * itemsize * rows * (lane(d_in) + lane(d_out))
               + wsz * (lane(d_in) * lane(hidden) + lane(hidden) * lane(d_out))
               + 4 * rows * lane(hidden)                   # f32 hidden activations
               + 4 * (3 * lane(hidden) + lane(d_out)))
        if est > 16 * 1024 * 1024:
            vmem_limit_bytes = min(int(est * 3 // 2), 56 * 1024 * 1024)

    kernel = functools.partial(_mlp_layer_kernel, eps=eps)

    def build(single_buffer_consts: bool):
        if single_buffer_consts:
            # Grid-invariant operands: constant index_map -> single buffer.
            def const_spec(shape):
                return pl.BlockSpec(shape, lambda i: (0, 0),
                                    pipeline_mode=pl.Buffered(1))
        else:
            def const_spec(shape):
                return pl.BlockSpec(shape, lambda i: (0, 0))

        return pl.pallas_call(
            kernel,
            out_shape=jax.ShapeDtypeStruct((N, d_out), x.dtype),
            grid_spec=pltpu.PrefetchScalarGridSpec(
                num_scalar_prefetch=0,
                grid=grid,
                in_specs=[
                    pl.BlockSpec((tile_n, d_in), lambda i: (i, 0)),  # x rows
                    const_spec((d_in, hidden)),                      # W1
                    const_spec((1, hidden)),                         # b1
                    const_spec((1, hidden)),                         # LN gamma
                    const_spec((1, hidden)),                         # LN beta
                    const_spec((hidden, d_out)),                     # W2
                    const_spec((1, d_out)),                          # b2
                ],
                out_specs=pl.BlockSpec((tile_n, d_out), lambda i: (i, 0)),
            ),
            compiler_params=pltpu.CompilerParams(
                dimension_semantics=("parallel",),
                vmem_limit_bytes=vmem_limit_bytes),
        )

    try:
        return build(True)(x, w1, b1f, gf, bef, w2, b2f)
    except Exception:
        # Fallback for environments where Buffered(1) is not accepted.
        return build(False)(x, w1, b1f, gf, bef, w2, b2f)


def _reference(x, w1, b1, gamma, beta, w2, b2, eps=1e-5):
    hp = jax.lax.Precision.HIGHEST
    h = jnp.dot(x, w1, precision=hp) + b1
    mean = jnp.mean(h, axis=-1, keepdims=True)
    var = jnp.mean((h - mean) ** 2, axis=-1, keepdims=True)
    h = (h - mean) * jax.lax.rsqrt(var + eps) * gamma + beta
    h = jnp.maximum(h, 0.0)
    return jnp.dot(h, w2, precision=hp) + b2


if __name__ == "__main__":
    key = jax.random.PRNGKey(0)
    N, input_dim, hidden_dim, output_dim = 16, 32, 64, 32

    k_x, k_w1, k_w2 = jax.random.split(key, 3)

    x = jax.random.normal(k_x, (N, input_dim), dtype=jnp.float32)

    # Deterministic synthetic init (QCNet weight_init ~ xavier / zeros / ones).
    w1 = jax.random.normal(k_w1, (input_dim, hidden_dim), jnp.float32) * (
        1.0 / jnp.sqrt(input_dim))
    b1 = jnp.zeros((hidden_dim,), jnp.float32)
    gamma = jnp.ones((hidden_dim,), jnp.float32)
    beta = jnp.zeros((hidden_dim,), jnp.float32)
    w2 = jax.random.normal(k_w2, (hidden_dim, output_dim), jnp.float32) * (
        1.0 / jnp.sqrt(hidden_dim))
    b2 = jnp.zeros((output_dim,), jnp.float32)

    out = mlp_layer(x, w1, b1, gamma, beta, w2, b2)
    out = jax.block_until_ready(out)

    ref = _reference(x, w1, b1, gamma, beta, w2, b2)
    assert out.shape == (N, output_dim)
    assert jnp.allclose(out, ref, atol=5e-3, rtol=5e-3), "mismatch vs reference"

    print("KERNEL_OK")
</pallas_src>

<mosaic_0001>
module attributes {stable_mosaic.version = 11 : i64} {
  func.func @_mlp_layer_kernel(%arg0: i32, %arg1: memref<16x32xf32, #tpu.memory_space<vmem>>, %arg2: memref<32x64xf32, #tpu.memory_space<vmem>>, %arg3: memref<1x64xf32, #tpu.memory_space<vmem>>, %arg4: memref<1x64xf32, #tpu.memory_space<vmem>>, %arg5: memref<1x64xf32, #tpu.memory_space<vmem>>, %arg6: memref<64x32xf32, #tpu.memory_space<vmem>>, %arg7: memref<1x32xf32, #tpu.memory_space<vmem>>, %arg8: memref<16x32xf32, #tpu.memory_space<vmem>>) attributes {dimension_semantics = [#tpu.dimension_semantics<parallel>], iteration_bounds = array<i64: 1>, scalar_prefetch = 0 : i64, scratch_operands = 0 : i64, tpu.core_type = #tpu.core_type<tc>, window_params = [{transform_indices = @transform_0, window_bounds = array<i64: 16, 32>}, {pipeline_mode = #tpu.pipeline_mode<synchronous>, transform_indices = @transform_1, window_bounds = array<i64: 32, 64>}, {pipeline_mode = #tpu.pipeline_mode<synchronous>, transform_indices = @transform_2, window_bounds = array<i64: 1, 64>}, {pipeline_mode = #tpu.pipeline_mode<synchronous>, transform_indices = @transform_3, window_bounds = array<i64: 1, 64>}, {pipeline_mode = #tpu.pipeline_mode<synchronous>, transform_indices = @transform_4, window_bounds = array<i64: 1, 64>}, {pipeline_mode = #tpu.pipeline_mode<synchronous>, transform_indices = @transform_5, window_bounds = array<i64: 64, 32>}, {pipeline_mode = #tpu.pipeline_mode<synchronous>, transform_indices = @transform_6, window_bounds = array<i64: 1, 32>}, {transform_indices = @transform_7, window_bounds = array<i64: 16, 32>}]} {
    %c0 = arith.constant 0 : index
    %c0_0 = arith.constant 0 : index
    %0 = vector.load %arg1[%c0, %c0_0] : memref<16x32xf32, #tpu.memory_space<vmem>>, vector<16x32xf32>
    %c0_1 = arith.constant 0 : index
    %c0_2 = arith.constant 0 : index
    %1 = vector.load %arg2[%c0_1, %c0_2] : memref<32x64xf32, #tpu.memory_space<vmem>>, vector<32x64xf32>
    %cst = arith.constant dense<0.000000e+00> : vector<16x64xf32>
    %2 = tpu.matmul %0, %1, %cst {dimension_numbers = #tpu.dot_dimension_numbers<[1], [0], [0], [1], [0, 0, 1, 1], [], []>} : vector<16x32xf32>, vector<32x64xf32>, vector<16x64xf32> -> vector<16x64xf32>
    %c0_3 = arith.constant 0 : index
    %c0_4 = arith.constant 0 : index
    %3 = vector.load %arg3[%c0_3, %c0_4] : memref<1x64xf32, #tpu.memory_space<vmem>>, vector<1x64xf32>
    %4 = vector.broadcast %3 : vector<1x64xf32> to vector<16x64xf32>
    %5 = arith.addf %2, %4 : vector<16x64xf32>
    %cst_5 = arith.constant dense<0.000000e+00> : vector<16xf32>
    %6 = vector.multi_reduction <add>, %5, %cst_5 [1] : vector<16x64xf32> to vector<16xf32>
    %7 = vector.shape_cast %6 : vector<16xf32> to vector<16x1xf32>
    %cst_6 = arith.constant 6.400000e+01 : f32
    %8 = vector.broadcast %cst_6 : f32 to vector<16x1xf32>
    %9 = arith.divf %7, %8 : vector<16x1xf32>
    %10 = vector.broadcast %9 : vector<16x1xf32> to vector<16x64xf32>
    %11 = arith.subf %5, %10 : vector<16x64xf32>
    %12 = arith.mulf %11, %11 : vector<16x64xf32>
    %cst_7 = arith.constant dense<0.000000e+00> : vector<16xf32>
    %13 = vector.multi_reduction <add>, %12, %cst_7 [1] : vector<16x64xf32> to vector<16xf32>
    %14 = vector.shape_cast %13 : vector<16xf32> to vector<16x1xf32>
    %cst_8 = arith.constant 6.400000e+01 : f32
    %15 = vector.broadcast %cst_8 : f32 to vector<16x1xf32>
    %16 = arith.divf %14, %15 : vector<16x1xf32>
    %cst_9 = arith.constant 9.99999974E-6 : f32
    %17 = vector.broadcast %cst_9 : f32 to vector<16x1xf32>
    %18 = arith.addf %16, %17 : vector<16x1xf32>
    %19 = math.rsqrt %18 : vector<16x1xf32>
    %20 = vector.broadcast %19 : vector<16x1xf32> to vector<16x64xf32>
    %21 = arith.mulf %11, %20 : vector<16x64xf32>
    %c0_10 = arith.constant 0 : index
    %c0_11 = arith.constant 0 : index
    %22 = vector.load %arg4[%c0_10, %c0_11] : memref<1x64xf32, #tpu.memory_space<vmem>>, vector<1x64xf32>
    %23 = vector.broadcast %22 : vector<1x64xf32> to vector<16x64xf32>
    %24 = arith.mulf %21, %23 : vector<16x64xf32>
    %c0_12 = arith.constant 0 : index
    %c0_13 = arith.constant 0 : index
    %25 = vector.load %arg5[%c0_12, %c0_13] : memref<1x64xf32, #tpu.memory_space<vmem>>, vector<1x64xf32>
    %26 = vector.broadcast %25 : vector<1x64xf32> to vector<16x64xf32>
    %27 = arith.addf %24, %26 : vector<16x64xf32>
    %cst_14 = arith.constant 0.000000e+00 : f32
    %28 = vector.broadcast %cst_14 : f32 to vector<16x64xf32>
    %29 = arith.maximumf %27, %28 : vector<16x64xf32>
    %c0_15 = arith.constant 0 : index
    %c0_16 = arith.constant 0 : index
    %30 = vector.load %arg6[%c0_15, %c0_16] : memref<64x32xf32, #tpu.memory_space<vmem>>, vector<64x32xf32>
    %cst_17 = arith.constant dense<0.000000e+00> : vector<16x32xf32>
    %31 = tpu.matmul %29, %30, %cst_17 {dimension_numbers = #tpu.dot_dimension_numbers<[1], [0], [0], [1], [0, 0, 1, 1], [], []>} : vector<16x64xf32>, vector<64x32xf32>, vector<16x32xf32> -> vector<16x32xf32>
    %c0_18 = arith.constant 0 : index
    %c0_19 = arith.constant 0 : index
    %32 = vector.load %arg7[%c0_18, %c0_19] : memref<1x32xf32, #tpu.memory_space<vmem>>, vector<1x32xf32>
    %33 = vector.broadcast %32 : vector<1x32xf32> to vector<16x32xf32>
    %34 = arith.addf %31, %33 : vector<16x32xf32>
    %c0_20 = arith.constant 0 : index
    %c0_21 = arith.constant 0 : index
    %35 = vector.load %arg8[%c0_20, %c0_21] : memref<16x32xf32, #tpu.memory_space<vmem>>, vector<16x32xf32>
    tpu.vector_store %arg8[%c0_20, %c0_21], %34 {strides = array<i32>} : memref<16x32xf32, #tpu.memory_space<vmem>>, vector<16x32xf32>,
    return
  }
  func.func @transform_0(%arg0: i32) -> (i32, i32) {
    %c0_i32 = arith.constant 0 : i32
    %c0_i32_0 = arith.constant 0 : i32
    return %arg0, %c0_i32 : i32, i32
  }
  func.func @transform_1(%arg0: i32) -> (i32, i32) {
    %c0_i32 = arith.constant 0 : i32
    %c0_i32_0 = arith.constant 0 : i32
    %c0_i32_1 = arith.constant 0 : i32
    return %c0_i32, %c0_i32_0 : i32, i32
  }
  func.func @transform_2(%arg0: i32) -> (i32, i32) {
    %c0_i32 = arith.constant 0 : i32
    %c0_i32_0 = arith.constant 0 : i32
    %c0_i32_1 = arith.constant 0 : i32
    return %c0_i32, %c0_i32_0 : i32, i32
  }
  func.func @transform_3(%arg0: i32) -> (i32, i32) {
    %c0_i32 = arith.constant 0 : i32
    %c0_i32_0 = arith.constant 0 : i32
    %c0_i32_1 = arith.constant 0 : i32
    return %c0_i32, %c0_i32_0 : i32, i32
  }
  func.func @transform_4(%arg0: i32) -> (i32, i32) {
    %c0_i32 = arith.constant 0 : i32
    %c0_i32_0 = arith.constant 0 : i32
    %c0_i32_1 = arith.constant 0 : i32
    return %c0_i32, %c0_i32_0 : i32, i32
  }
  func.func @transform_5(%arg0: i32) -> (i32, i32) {
    %c0_i32 = arith.constant 0 : i32
    %c0_i32_0 = arith.constant 0 : i32
    %c0_i32_1 = arith.constant 0 : i32
    return %c0_i32, %c0_i32_0 : i32, i32
  }
  func.func @transform_6(%arg0: i32) -> (i32, i32) {
    %c0_i32 = arith.constant 0 : i32
    %c0_i32_0 = arith.constant 0 : i32
    %c0_i32_1 = arith.constant 0 : i32
    return %c0_i32, %c0_i32_0 : i32, i32
  }
  func.func @transform_7(%arg0: i32) -> (i32, i32) {
    %c0_i32 = arith.constant 0 : i32
    %c0_i32_0 = arith.constant 0 : i32
    return %arg0, %c0_i32 : i32, i32
  }
}

module attributes {stable_mosaic.version = 11 : i64} {
  func.func @_mlp_layer_kernel(%arg0: i32, %arg1: memref<16x32xf32, #tpu.memory_space<vmem>>, %arg2: memref<32x64xf32, #tpu.memory_space<vmem>>, %arg3: memref<1x64xf32, #tpu.memory_space<vmem>>, %arg4: memref<1x64xf32, #tpu.memory_space<vmem>>, %arg5: memref<1x64xf32, #tpu.memory_space<vmem>>, %arg6: memref<64x32xf32, #tpu.memory_space<vmem>>, %arg7: memref<1x32xf32, #tpu.memory_space<vmem>>, %arg8: memref<16x32xf32, #tpu.memory_space<vmem>>) attributes {dimension_semantics = [#tpu.dimension_semantics<parallel>], iteration_bounds = array<i64: 1>, scalar_prefetch = 0 : i64, scratch_operands = 0 : i64, tpu.core_type = #tpu.core_type<tc>, window_params = [{transform_indices = @transform_0, window_bounds = array<i64: 16, 32>}, {pipeline_mode = #tpu.pipeline_mode<synchronous>, transform_indices = @transform_1, window_bounds = array<i64: 32, 64>}, {pipeline_mode = #tpu.pipeline_mode<synchronous>, transform_indices = @transform_2, window_bounds = array<i64: 1, 64>}, {pipeline_mode = #tpu.pipeline_mode<synchronous>, transform_indices = @transform_3, window_bounds = array<i64: 1, 64>}, {pipeline_mode = #tpu.pipeline_mode<synchronous>, transform_indices = @transform_4, window_bounds = array<i64: 1, 64>}, {pipeline_mode = #tpu.pipeline_mode<synchronous>, transform_indices = @transform_5, window_bounds = array<i64: 64, 32>}, {pipeline_mode = #tpu.pipeline_mode<synchronous>, transform_indices = @transform_6, window_bounds = array<i64: 1, 32>}, {transform_indices = @transform_7, window_bounds = array<i64: 16, 32>}]} {
    %c0 = arith.constant 0 : index
    %c0_0 = arith.constant 0 : index
    %0 = vector.load %arg1[%c0, %c0_0] : memref<16x32xf32, #tpu.memory_space<vmem>>, vector<16x32xf32>
    %c0_1 = arith.constant 0 : index
    %c0_2 = arith.constant 0 : index
    %1 = vector.load %arg2[%c0_1, %c0_2] : memref<32x64xf32, #tpu.memory_space<vmem>>, vector<32x64xf32>
    %cst = arith.constant dense<0.000000e+00> : vector<16x64xf32>
    %2 = tpu.matmul %0, %1, %cst {dimension_numbers = #tpu.dot_dimension_numbers<[1], [0], [0], [1], [0, 0, 1, 1], [], []>} : vector<16x32xf32>, vector<32x64xf32>, vector<16x64xf32> -> vector<16x64xf32>
    %c0_3 = arith.constant 0 : index
    %c0_4 = arith.constant 0 : index
    %3 = vector.load %arg3[%c0_3, %c0_4] : memref<1x64xf32, #tpu.memory_space<vmem>>, vector<1x64xf32>
    %4 = vector.broadcast %3 : vector<1x64xf32> to vector<16x64xf32>
    %5 = arith.addf %2, %4 : vector<16x64xf32>
    %cst_5 = arith.constant dense<0.000000e+00> : vector<16xf32>
    %6 = vector.multi_reduction <add>, %5, %cst_5 [1] : vector<16x64xf32> to vector<16xf32>
    %7 = vector.shape_cast %6 : vector<16xf32> to vector<16x1xf32>
    %cst_6 = arith.constant 6.400000e+01 : f32
    %8 = vector.broadcast %cst_6 : f32 to vector<16x1xf32>
    %9 = arith.divf %7, %8 : vector<16x1xf32>
    %10 = vector.broadcast %9 : vector<16x1xf32> to vector<16x64xf32>
    %11 = arith.subf %5, %10 : vector<16x64xf32>
    %12 = arith.mulf %11, %11 : vector<16x64xf32>
    %cst_7 = arith.constant dense<0.000000e+00> : vector<16xf32>
    %13 = vector.multi_reduction <add>, %12, %cst_7 [1] : vector<16x64xf32> to vector<16xf32>
    %14 = vector.shape_cast %13 : vector<16xf32> to vector<16x1xf32>
    %cst_8 = arith.constant 6.400000e+01 : f32
    %15 = vector.broadcast %cst_8 : f32 to vector<16x1xf32>
    %16 = arith.divf %14, %15 : vector<16x1xf32>
    %cst_9 = arith.constant 9.99999974E-6 : f32
    %17 = vector.broadcast %cst_9 : f32 to vector<16x1xf32>
    %18 = arith.addf %16, %17 : vector<16x1xf32>
    %19 = math.rsqrt %18 : vector<16x1xf32>
    %20 = vector.broadcast %19 : vector<16x1xf32> to vector<16x64xf32>
    %21 = arith.mulf %11, %20 : vector<16x64xf32>
    %c0_10 = arith.constant 0 : index
    %c0_11 = arith.constant 0 : index
    %22 = vector.load %arg4[%c0_10, %c0_11] : memref<1x64xf32, #tpu.memory_space<vmem>>, vector<1x64xf32>
    %23 = vector.broadcast %22 : vector<1x64xf32> to vector<16x64xf32>
    %24 = arith.mulf %21, %23 : vector<16x64xf32>
    %c0_12 = arith.constant 0 : index
    %c0_13 = arith.constant 0 : index
    %25 = vector.load %arg5[%c0_12, %c0_13] : memref<1x64xf32, #tpu.memory_space<vmem>>, vector<1x64xf32>
    %26 = vector.broadcast %25 : vector<1x64xf32> to vector<16x64xf32>
    %27 = arith.addf %24, %26 : vector<16x64xf32>
    %cst_14 = arith.constant 0.000000e+00 : f32
    %28 = vector.broadcast %cst_14 : f32 to vector<16x64xf32>
    %29 = arith.maximumf %27, %28 : vector<16x64xf32>
    %c0_15 = arith.constant 0 : index
    %c0_16 = arith.constant 0 : index
    %30 = vector.load %arg6[%c0_15, %c0_16] : memref<64x32xf32, #tpu.memory_space<vmem>>, vector<64x32xf32>
    %cst_17 = arith.constant dense<0.000000e+00> : vector<16x32xf32>
    %31 = tpu.matmul %29, %30, %cst_17 {dimension_numbers = #tpu.dot_dimension_numbers<[1], [0], [0], [1], [0, 0, 1, 1], [], []>} : vector<16x64xf32>, vector<64x32xf32>, vector<16x32xf32> -> vector<16x32xf32>
    %c0_18 = arith.constant 0 : index
    %c0_19 = arith.constant 0 : index
    %32 = vector.load %arg7[%c0_18, %c0_19] : memref<1x32xf32, #tpu.memory_space<vmem>>, vector<1x32xf32>
    %33 = vector.broadcast %32 : vector<1x32xf32> to vector<16x32xf32>
    %34 = arith.addf %31, %33 : vector<16x32xf32>
    %c0_20 = arith.constant 0 : index
    %c0_21 = arith.constant 0 : index
    %35 = vector.load %arg8[%c0_20, %c0_21] : memref<16x32xf32, #tpu.memory_space<vmem>>, vector<16x32xf32>
    tpu.vector_store %arg8[%c0_20, %c0_21], %34 {strides = array<i32>} : memref<16x32xf32, #tpu.memory_space<vmem>>, vector<16x32xf32>,
    return
  }
  func.func @transform_0(%arg0: i32) -> (i32, i32) {
    %c0_i32 = arith.constant 0 : i32
    %c0_i32_0 = arith.constant 0 : i32
    return %arg0, %c0_i32 : i32, i32
  }
  func.func @transform_1(%arg0: i32) -> (i32, i32) {
    %c0_i32 = arith.constant 0 : i32
    %c0_i32_0 = arith.constant 0 : i32
    %c0_i32_1 = arith.constant 0 : i32
    return %c0_i32, %c0_i32_0 : i32, i32
  }
  func.func @transform_2(%arg0: i32) -> (i32, i32) {
    %c0_i32 = arith.constant 0 : i32
    %c0_i32_0 = arith.constant 0 : i32
    %c0_i32_1 = arith.constant 0 : i32
    return %c0_i32, %c0_i32_0 : i32, i32
  }
  func.func @transform_3(%arg0: i32) -> (i32, i32) {
    %c0_i32 = arith.constant 0 : i32
    %c0_i32_0 = arith.constant 0 : i32
    %c0_i32_1 = arith.constant 0 : i32
    return %c0_i32, %c0_i32_0 : i32, i32
  }
  func.func @transform_4(%arg0: i32) -> (i32, i32) {
    %c0_i32 = arith.constant 0 : i32
    %c0_i32_0 = arith.constant 0 : i32
    %c0_i32_1 = arith.constant 0 : i32
    return %c0_i32, %c0_i32_0 : i32, i32
  }
  func.func @transform_5(%arg0: i32) -> (i32, i32) {
    %c0_i32 = arith.constant 0 : i32
    %c0_i32_0 = arith.constant 0 : i32
    %c0_i32_1 = arith.constant 0 : i32
    return %c0_i32, %c0_i32_0 : i32, i32
  }
  func.func @transform_6(%arg0: i32) -> (i32, i32) {
    %c0_i32 = arith.constant 0 : i32
    %c0_i32_0 = arith.constant 0 : i32
    %c0_i32_1 = arith.constant 0 : i32
    return %c0_i32, %c0_i32_0 : i32, i32
  }
  func.func @transform_7(%arg0: i32) -> (i32, i32) {
    %c0_i32 = arith.constant 0 : i32
    %c0_i32_0 = arith.constant 0 : i32
    return %arg0, %c0_i32 : i32, i32
  }
}

</mosaic_0001>

<bundles_post_ra>
// kernel: tpu_custom_call.1
= control target key start
LH: loop header
LB: loop body
LE: loop exit
PB: predicated region body
PF: predicated region fallthrough
CT: control target
= control target key end

     0   :  { %vm40_vm0 = vcmask 261120   ;;  %s512_s0 = inlined_call_operand.vmem [shape: f32[16,32], index: 0, kind: input, shape index: {}]   ;;  %s513_s1 = inlined_call_operand.vmem [shape: f32[32,64], index: 1, kind: input, shape index: {}]   ;;  %s514_s2 = inlined_call_operand.vmem [shape: f32[1,64], index: 2, kind: input, shape index: {}]   ;;  %s515_s3 = inlined_call_operand.vmem [shape: f32[1,64], index: 3, kind: input, shape index: {}]   ;;  %s516_s4 = inlined_call_operand.vmem [shape: f32[1,64], index: 4, kind: input, shape index: {}]   ;;  %s517_s5 = inlined_call_operand.vmem [shape: f32[64,32], index: 5, kind: input, shape index: {}]   ;;  %s518_s6 = inlined_call_operand.vmem [shape: f32[1,32], index: 6, kind: input, shape index: {}]   ;;  %s519_s7 = inlined_call_operand.hbm [shape: f32[16,32], index: 7, kind: output, shape index: {}]  }
   0x1   :  { %v29_v0 = vld [vmem:[%s513_s1] sm:$0xff]  ;;  %v30_v1 = vld [vmem:[%s513_s1 + $0x8] sm:$0xff]  ;;  %v31_v2 = vld [vmem:[%s513_s1 + $0x10] sm:$0xff] }
   0x2   :  { %v338_v3 = vpack.c.bf16 %v30_v1, %v29_v0  ;;  %v32_v4 = vld [vmem:[%s513_s1 + $0x18] sm:$0xff]  ;;  %v27_v5 = vld [vmem:[%s512_s0] sm:$0xff] }
   0x3   :  { %v342_v6 = vpack.c.bf16 %v32_v4, %v31_v2  ;;  %316 = vmatprep.mubr.msk.f32.mxu0 %vm40_vm0, %v27_v5 }
   0x4   :  { %12 = vsyncpa [#allocation3], 0  ;;  %339 = vmatprep.subr.bf16.mxu0 %v338_v3  ;;  %v28_v7 = vld [vmem:[%s512_s0 + $0x8] sm:$0xff]  ;;  %v284_v8 = vld [vmem:[%s514_s2] ss:$0 sm:$0xff]  ;;  %vm122_vm1 = vcmask 523264  }
   0x5   :  { %341 = vmatpush3.bf16.msra.mxu0 %v338_v3  ;;  %v170_v25 = vld [vmem:[%s517_s5] sm:$0xff]  ;;  %v171_v26 = vld [vmem:[%s517_s5 + $0x8] sm:$0xff]  ;;  %v172_v27 = vld [vmem:[%s517_s5 + $0x10] sm:$0xff] }
   0x6   :  { %343 = vmatprep.subr.bf16.mxu0 %v342_v6  ;;  %v346_v28 = vpack.c.bf16 %v171_v26, %v170_v25  ;;  %v173_v29 = vld [vmem:[%s517_s5 + $0x18] sm:$0xff]  ;;  %v174_v31 = vld [vmem:[%s517_s5 + $0x20] sm:$0xff]  ;;  %v175_v32 = vld [vmem:[%s517_s5 + $0x28] sm:$0xff] }
   0x7   :  { %v350_v30 = vpack.c.bf16 %v173_v29, %v172_v27  ;;  %v354_v33 = vpack.c.bf16 %v175_v32, %v174_v31  ;;  %v176_v34 = vld [vmem:[%s517_s5 + $0x30] sm:$0xff]  ;;  %v177_v35 = vld [vmem:[%s517_s5 + $0x38] sm:$0xff]  ;;  %v287_v44 = vld [vmem:[%s515_s3] ss:$0 sm:$0xff]  ;;  %s393_s3 = smov [#allocation2]  }
   0x8   :  { %347 = vmatprep.subr.bf16.mxu1 %v346_v28  ;;  %v358_v36 = vpack.c.bf16 %v177_v35, %v176_v34  ;;  %v288_v46 = vld [vmem:[%s516_s4] ss:$0 sm:$0xff]  ;;  %s273_s10 = sshll.u32 %s393_s3, 4  ;;  %s274_s10 = int_to_ptr.vmem [resolvable:$true] %s273_s10 }
   0x9   :  { %345 = vmatpush3.bf16.msra.mxu0 %v342_v6  ;;  %349 = vmatpush3.bf16.msra.mxu1 %v346_v28  ;;  %v289_v55 = vld [vmem:[%s518_s6] ss:$0 sm:$0xff]  ;;  %s369_s4 = scalar_lea.vmem %s274_s10, 256  ;;  %p374_p1 = scmp.lt.s32.totalorder %s274_s10, %s274_s10 }
   0xa   :  { %351 = vmatprep.subr.bf16.mxu1 %v350_v30  ;;  %p370_p0 = scmp.ne.s32.totalorder %s274_s10, %s369_s4  ;;  %p375_p2 = scmp.lt.s32.totalorder %s369_s4, %s369_s4 }
   0xc   :  { %317 = vmatmul.mubr.msk.f32.vlgmr.msra.gmra.mrb[0].mxu0 %vm40_vm0, %v28_v7  ;;  %p376_p3 = por %p375_p2, %p374_p1 }
   0xd   :  { %353 = vmatpush3.bf16.msra.mxu1 %v350_v30 }
   0xe   :  { %355 = vmatprep.subr.bf16.mxu1 %v354_v33  ;;  %p377_p4 = pnand %p376_p3, %p370_p0 }
  0x11   :  { %357 = vmatpush3.bf16.msra.mxu1 %v354_v33 }
  0x12   :  { %359 = vmatprep.subr.bf16.mxu1 %v358_v36 }
  0x15   :  { %361 = vmatpush3.bf16.msra.mxu1 %v358_v36 }
  0xdf   :  { %v318_v9 = vpop.f32.mrb[0].mxu0 }
  0xe0   :  { %v113_v10 = vpop.f32.mrb[1].mxu0  ;;  %v119_v12 = vadd.f32 %v318_v9, %v284_v8 }
  0xe1   :  { %v114_v11 = vadd.f32 %v284_v8, %v113_v10 }
  0xe2   :  { %v126_v14 = vsel %vm122_vm1, %v119_v12, 0.0 }
  0xe3   :  { %v123_v13 = vsel %vm122_vm1, %v114_v11, 0.0 }
  0xe4   :  { %124 = vadd.xlane.f32.xlu0 %v123_v13 }
  0xe8   :  { %127 = vadd.xlane.f32.xlu0 %v126_v14 }
 0x171   :  { %v125_v15 = vpop.xlane.xlu0 %124 }
 0x172   :  { %v130_v16 = vmul.f32 0.015625, %v125_v15 }
 0x174   :  { %v132_v17 = vsub.f32 %v114_v11, %v130_v16 }
 0x175   :  { %v128_v18 = vpop.xlane.xlu0 %127 }
 0x176   :  { %v131_v19 = vmul.f32 0.015625, %v128_v18  ;;  %v134_v20 = vmul.f32 %v132_v17, %v132_v17 }
 0x178   :  { %v133_v21 = vsub.f32 %v119_v12, %v131_v19  ;;  %v136_v22 = vsel %vm122_vm1, %v134_v20, 0.0 }
 0x179   :  { %137 = vadd.xlane.f32.xlu1 %v136_v22 }
 0x17a   :  { %v135_v23 = vmul.f32 %v133_v21, %v133_v21 }
 0x17c   :  { %v139_v24 = vsel %vm122_vm1, %v135_v23, 0.0 }
 0x17d   :  { %140 = vadd.xlane.f32.xlu1 %v139_v24 }
 0x206   :  { %v138_v37 = vpop.xlane.xlu1 %137 }
 0x207   :  { %v142_v38 = vmul.f32 0.015625, %v138_v37 }
 0x209   :  { %v144_v39 = vadd.f32 1e-05, %v142_v38 }
 0x20a   :  { %v141_v40 = vpop.xlane.xlu1 %140 }
 0x20b   :  { %365 = vrsqrt.f32 %v144_v39  ;;  %v143_v41 = vmul.f32 0.015625, %v141_v40 }
 0x20d   :  { %v145_v42 = vadd.f32 1e-05, %v143_v41 }
 0x20f   :  { %367 = vrsqrt.f32 %v145_v42 }
 0x215   :  { %v366_v43 = vpop.eup %365 }
 0x216   :  { %v148_v45 = vmul.f32 %v366_v43, %v132_v17 }
 0x218   :  { %v157_v47 = vmul.f32 %v287_v44, %v148_v45 }
 0x219   :  { %v368_v48 = vpop.eup %367 }
 0x21a   :  { %v149_v49 = vmul.f32 %v368_v48, %v133_v21  ;;  %v166_v50 = vadd.f32 %v288_v46, %v157_v47 }
 0x21c   :  { %v158_v51 = vmul.f32 %v287_v44, %v149_v49  ;;  %v168_v52 = vmax.f32 %v166_v50, 0.0 }
 0x21e   :  { %v167_v53 = vadd.f32 %v288_v46, %v158_v51  ;;  %335 = vmatprep.mubr.msk.f32.mxu1 %vm122_vm1, %v168_v52 }
 0x220   :  { %v169_v54 = vmax.f32 %v167_v53, 0.0 }
 0x222   :  { %336 = vmatmul.mubr.msk.f32.vlgmr.msra.gmra.mrb[0].mxu1 %vm122_vm1, %v169_v54 }
 0x2f5   :  { %v337_v56 = vpop.f32.mrb[0].mxu1 }
 0x2f6   :  { %v263_v57 = vadd.f32 %v337_v56, %v289_v55  ;;  %v257_v58 = vpop.f32.mrb[1].mxu1 }
 0x2f7   :  { %v258_v59 = vadd.f32 %v289_v55, %v257_v58 }
 0x2f8   :  { %267 = vst.msk [vmem:[#allocation2 + $0x8] sm:$0xff] %vm40_vm0, %v263_v57 }
 0x2f9   :  { %266 = vst.msk [vmem:[#allocation2] sm:$0xff] %vm40_vm0, %v258_v59 }
 0x2fa   :  { %380 = shalt.err (!%p377_p4)
}
 0x2fb   :  { %s381_s12 = scalar_lea.hbm %s519_s7, 256 }
 0x2fc   :  { %p382_p5 = scmp.ne.s32.totalorder %s519_s7, %s381_s12  ;;  %p385_p6 = scmp.lt.u32.totalorder %s381_s12, %s519_s7 }
 0x2fe   :  { %p387_p7 = pnand %p385_p6, %p382_p5 }
 0x300   :  { %390 = shalt.err (!%p387_p7)
}
 0x301   :  { %s394_s14 = smov 128   ;;  %s395_s15 = smov 8  }
 0x302   :  { %279 = dma.vmem_to_hbm [thread:$0]  %s274_s10, 256, %s519_s7, [#allocation3], %s394_s14, %s394_s14, %s395_s15  }
 0x303   :  { %391 = dma.done.wait [#allocation3], 256  }
 0x304   :  { %392 = vsyncadd [#allocation3], 4294967040 }
 0x305   :  { %283 = vsyncpa [#allocation3], 1 }

// kernel: tpu_custom_call.1
= control target key start
LH: loop header
LB: loop body
LE: loop exit
PB: predicated region body
PF: predicated region fallthrough
CT: control target
= control target key end

     0   :  { %vm40_vm0 = vcmask 261120   ;;  %s512_s0 = inlined_call_operand.vmem [shape: f32[16,32], index: 0, kind: input, shape index: {}]   ;;  %s513_s1 = inlined_call_operand.vmem [shape: f32[32,64], index: 1, kind: input, shape index: {}]   ;;  %s514_s2 = inlined_call_operand.vmem [shape: f32[1,64], index: 2, kind: input, shape index: {}]   ;;  %s515_s3 = inlined_call_operand.vmem [shape: f32[1,64], index: 3, kind: input, shape index: {}]   ;;  %s516_s4 = inlined_call_operand.vmem [shape: f32[1,64], index: 4, kind: input, shape index: {}]   ;;  %s517_s5 = inlined_call_operand.vmem [shape: f32[64,32], index: 5, kind: input, shape index: {}]   ;;  %s518_s6 = inlined_call_operand.vmem [shape: f32[1,32], index: 6, kind: input, shape index: {}]   ;;  %s519_s7 = inlined_call_operand.hbm [shape: f32[16,32], index: 7, kind: output, shape index: {}]  }
   0x1   :  { %v29_v0 = vld [vmem:[%s513_s1] sm:$0xff]  ;;  %v30_v1 = vld [vmem:[%s513_s1 + $0x8] sm:$0xff]  ;;  %v31_v2 = vld [vmem:[%s513_s1 + $0x10] sm:$0xff] }
   0x2   :  { %v338_v3 = vpack.c.bf16 %v30_v1, %v29_v0  ;;  %v32_v4 = vld [vmem:[%s513_s1 + $0x18] sm:$0xff]  ;;  %v27_v5 = vld [vmem:[%s512_s0] sm:$0xff] }
   0x3   :  { %v342_v6 = vpack.c.bf16 %v32_v4, %v31_v2  ;;  %316 = vmatprep.mubr.msk.f32.mxu0 %vm40_vm0, %v27_v5 }
   0x4   :  { %12 = vsyncpa [#allocation3], 0  ;;  %339 = vmatprep.subr.bf16.mxu0 %v338_v3  ;;  %v28_v7 = vld [vmem:[%s512_s0 + $0x8] sm:$0xff]  ;;  %v284_v8 = vld [vmem:[%s514_s2] ss:$0 sm:$0xff]  ;;  %vm122_vm1 = vcmask 523264  }
   0x5   :  { %341 = vmatpush3.bf16.msra.mxu0 %v338_v3  ;;  %v170_v25 = vld [vmem:[%s517_s5] sm:$0xff]  ;;  %v171_v26 = vld [vmem:[%s517_s5 + $0x8] sm:$0xff]  ;;  %v172_v27 = vld [vmem:[%s517_s5 + $0x10] sm:$0xff] }
   0x6   :  { %343 = vmatprep.subr.bf16.mxu0 %v342_v6  ;;  %v346_v28 = vpack.c.bf16 %v171_v26, %v170_v25  ;;  %v173_v29 = vld [vmem:[%s517_s5 + $0x18] sm:$0xff]  ;;  %v174_v31 = vld [vmem:[%s517_s5 + $0x20] sm:$0xff]  ;;  %v175_v32 = vld [vmem:[%s517_s5 + $0x28] sm:$0xff] }
   0x7   :  { %v350_v30 = vpack.c.bf16 %v173_v29, %v172_v27  ;;  %v354_v33 = vpack.c.bf16 %v175_v32, %v174_v31  ;;  %v176_v34 = vld [vmem:[%s517_s5 + $0x30] sm:$0xff]  ;;  %v177_v35 = vld [vmem:[%s517_s5 + $0x38] sm:$0xff]  ;;  %v287_v44 = vld [vmem:[%s515_s3] ss:$0 sm:$0xff]  ;;  %s393_s3 = smov [#allocation2]  }
   0x8   :  { %347 = vmatprep.subr.bf16.mxu1 %v346_v28  ;;  %v358_v36 = vpack.c.bf16 %v177_v35, %v176_v34  ;;  %v288_v46 = vld [vmem:[%s516_s4] ss:$0 sm:$0xff]  ;;  %s273_s10 = sshll.u32 %s393_s3, 4  ;;  %s274_s10 = int_to_ptr.vmem [resolvable:$true] %s273_s10 }
   0x9   :  { %345 = vmatpush3.bf16.msra.mxu0 %v342_v6  ;;  %349 = vmatpush3.bf16.msra.mxu1 %v346_v28  ;;  %v289_v55 = vld [vmem:[%s518_s6] ss:$0 sm:$0xff]  ;;  %s369_s4 = scalar_lea.vmem %s274_s10, 256  ;;  %p374_p1 = scmp.lt.s32.totalorder %s274_s10, %s274_s10 }
   0xa   :  { %351 = vmatprep.subr.bf16.mxu1 %v350_v30  ;;  %p370_p0 = scmp.ne.s32.totalorder %s274_s10, %s369_s4  ;;  %p375_p2 = scmp.lt.s32.totalorder %s369_s4, %s369_s4 }
   0xc   :  { %317 = vmatmul.mubr.msk.f32.vlgmr.msra.gmra.mrb[0].mxu0 %vm40_vm0, %v28_v7  ;;  %p376_p3 = por %p375_p2, %p374_p1 }
   0xd   :  { %353 = vmatpush3.bf16.msra.mxu1 %v350_v30 }
   0xe   :  { %355 = vmatprep.subr.bf16.mxu1 %v354_v33  ;;  %p377_p4 = pnand %p376_p3, %p370_p0 }
  0x11   :  { %357 = vmatpush3.bf16.msra.mxu1 %v354_v33 }
  0x12   :  { %359 = vmatprep.subr.bf16.mxu1 %v358_v36 }
  0x15   :  { %361 = vmatpush3.bf16.msra.mxu1 %v358_v36 }
  0xdf   :  { %v318_v9 = vpop.f32.mrb[0].mxu0 }
  0xe0   :  { %v113_v10 = vpop.f32.mrb[1].mxu0  ;;  %v119_v12 = vadd.f32 %v318_v9, %v284_v8 }
  0xe1   :  { %v114_v11 = vadd.f32 %v284_v8, %v113_v10 }
  0xe2   :  { %v126_v14 = vsel %vm122_vm1, %v119_v12, 0.0 }
  0xe3   :  { %v123_v13 = vsel %vm122_vm1, %v114_v11, 0.0 }
  0xe4   :  { %124 = vadd.xlane.f32.xlu0 %v123_v13 }
  0xe8   :  { %127 = vadd.xlane.f32.xlu0 %v126_v14 }
 0x171   :  { %v125_v15 = vpop.xlane.xlu0 %124 }
 0x172   :  { %v130_v16 = vmul.f32 0.015625, %v125_v15 }
 0x174   :  { %v132_v17 = vsub.f32 %v114_v11, %v130_v16 }
 0x175   :  { %v128_v18 = vpop.xlane.xlu0 %127 }
 0x176   :  { %v131_v19 = vmul.f32 0.015625, %v128_v18  ;;  %v134_v20 = vmul.f32 %v132_v17, %v132_v17 }
 0x178   :  { %v133_v21 = vsub.f32 %v119_v12, %v131_v19  ;;  %v136_v22 = vsel %vm122_vm1, %v134_v20, 0.0 }
 0x179   :  { %137 = vadd.xlane.f32.xlu1 %v136_v22 }
 0x17a   :  { %v135_v23 = vmul.f32 %v133_v21, %v133_v21 }
 0x17c   :  { %v139_v24 = vsel %vm122_vm1, %v135_v23, 0.0 }
 0x17d   :  { %140 = vadd.xlane.f32.xlu1 %v139_v24 }
 0x206   :  { %v138_v37 = vpop.xlane.xlu1 %137 }
 0x207   :  { %v142_v38 = vmul.f32 0.015625, %v138_v37 }
 0x209   :  { %v144_v39 = vadd.f32 1e-05, %v142_v38 }
 0x20a   :  { %v141_v40 = vpop.xlane.xlu1 %140 }
 0x20b   :  { %365 = vrsqrt.f32 %v144_v39  ;;  %v143_v41 = vmul.f32 0.015625, %v141_v40 }
 0x20d   :  { %v145_v42 = vadd.f32 1e-05, %v143_v41 }
 0x20f   :  { %367 = vrsqrt.f32 %v145_v42 }
 0x215   :  { %v366_v43 = vpop.eup %365 }
 0x216   :  { %v148_v45 = vmul.f32 %v366_v43, %v132_v17 }
 0x218   :  { %v157_v47 = vmul.f32 %v287_v44, %v148_v45 }
 0x219   :  { %v368_v48 = vpop.eup %367 }
 0x21a   :  { %v149_v49 = vmul.f32 %v368_v48, %v133_v21  ;;  %v166_v50 = vadd.f32 %v288_v46, %v157_v47 }
 0x21c   :  { %v158_v51 = vmul.f32 %v287_v44, %v149_v49  ;;  %v168_v52 = vmax.f32 %v166_v50, 0.0 }
 0x21e   :  { %v167_v53 = vadd.f32 %v288_v46, %v158_v51  ;;  %335 = vmatprep.mubr.msk.f32.mxu1 %vm122_vm1, %v168_v52 }
 0x220   :  { %v169_v54 = vmax.f32 %v167_v53, 0.0 }
 0x222   :  { %336 = vmatmul.mubr.msk.f32.vlgmr.msra.gmra.mrb[0].mxu1 %vm122_vm1, %v169_v54 }
 0x2f5   :  { %v337_v56 = vpop.f32.mrb[0].mxu1 }
 0x2f6   :  { %v263_v57 = vadd.f32 %v337_v56, %v289_v55  ;;  %v257_v58 = vpop.f32.mrb[1].mxu1 }
 0x2f7   :  { %v258_v59 = vadd.f32 %v289_v55, %v257_v58 }
 0x2f8   :  { %267 = vst.msk [vmem:[#allocation2 + $0x8] sm:$0xff] %vm40_vm0, %v263_v57 }
 0x2f9   :  { %266 = vst.msk [vmem:[#allocation2] sm:$0xff] %vm40_vm0, %v258_v59 }
 0x2fa   :  { %380 = shalt.err (!%p377_p4)
}
 0x2fb   :  { %s381_s12 = scalar_lea.hbm %s519_s7, 256 }
 0x2fc   :  { %p382_p5 = scmp.ne.s32.totalorder %s519_s7, %s381_s12  ;;  %p385_p6 = scmp.lt.u32.totalorder %s381_s12, %s519_s7 }
 0x2fe   :  { %p387_p7 = pnand %p385_p6, %p382_p5 }
 0x300   :  { %390 = shalt.err (!%p387_p7)
}
 0x301   :  { %s394_s14 = smov 128   ;;  %s395_s15 = smov 8  }
 0x302   :  { %279 = dma.vmem_to_hbm [thread:$0]  %s274_s10, 256, %s519_s7, [#allocation3], %s394_s14, %s394_s14, %s395_s15  }
 0x303   :  { %391 = dma.done.wait [#allocation3], 256  }
 0x304   :  { %392 = vsyncadd [#allocation3], 4294967040 }
 0x305   :  { %283 = vsyncpa [#allocation3], 1 }

</bundles_post_ra>
